<compile_context>
chip_gen: v5e
topology: v5e:2x2
jax: 0.10.0
libtpu: 0.0.40
codegen_flags: <defaults>
</compile_context>

<pallas_src>
import jax
import jax.numpy as jnp
from jax.experimental import pallas as pl
from jax.experimental.pallas import tpu as pltpu


def _round_up(a: int, b: int) -> int:
    return ((a + b - 1) // b) * b


def patch_proj_kernel(p_ref, w_ref, b_ref, o_ref):
    # p_ref: (TM, K_pad)    bf16 tile of flattened patches
    # w_ref: (K_pad, E_pad) bf16 conv weight (reshaped, transposed, zero-padded)
    # b_ref: (1, E_pad)     f32 conv bias (zero-padded)
    # o_ref: (TM, E_pad)    output tile (lane-dense: E_pad multiple of 128)
    acc = jnp.dot(p_ref[...], w_ref[...], preferred_element_type=jnp.float32)
    o_ref[...] = (acc + b_ref[...]).astype(o_ref.dtype)


def _resident_spec(block_shape):
    """BlockSpec for grid-invariant (resident) operands: constant index_map and,
    where supported, a single VMEM buffer (a tensor that never changes across
    grid steps does not need a second pipeline buffer)."""
    index_map = lambda i: (0,) * len(block_shape)
    try:
        return pl.BlockSpec(block_shape, index_map, pipeline_mode=pl.Buffered(1))
    except Exception:  # pipeline_mode / Buffered unavailable: default buffering
        return pl.BlockSpec(block_shape, index_map)


def custom_patch_embedding(x, weight, bias, patch_size, *, block_m=2048,
                           out_dtype=None):
    """Forward of CustomPatchEmbedding (pde == 'grid').

    x: (B, C, H, W) NCHW.  weight: (E, C, P, P).  bias: (E,).
    Returns (B, num_patches, E) with num_patches = (H//P)*(W//P).
    """
    B, C, H, W = x.shape
    P = int(patch_size)
    E = weight.shape[0]
    nh, nw = H // P, W // P
    num_patches = nh * nw
    Cpp = C * P * P
    M = B * num_patches
    out_dtype = x.dtype if out_dtype is None else out_dtype
    out_itemsize = jnp.dtype(out_dtype).itemsize

    # ---- glue (plain JAX): grid patch extraction, flattened in (C,P,P) order.
    # The bf16 cast sits inside the same expression so XLA fuses
    # cast -> transpose -> reshape (-> K-pad) into one copy: one f32 read of x,
    # one bf16 write of the patch matrix.
    xb = x[:, :, : nh * P, : nw * P].astype(jnp.bfloat16)        # crop remainder
    xp = jnp.transpose(xb.reshape(B, C, nh, P, nw, P), (0, 2, 4, 1, 3, 5))
    patches = xp.reshape(M, Cpp)                                  # row-major grid

    w_t = weight.reshape(E, Cpp).T.astype(jnp.bfloat16)           # (Cpp, E)
    b2 = bias.astype(jnp.float32).reshape(1, E)

    # ---- padding: K (explicit zeros, full MXU contraction width) and E
    # (lane-dense unmasked stores).  M is deliberately NOT padded.
    K_pad = _round_up(Cpp, 128)
    E_pad = _round_up(E, 128)
    if K_pad != Cpp:
        patches = jnp.pad(patches, ((0, 0), (0, K_pad - Cpp)))
    if K_pad != Cpp or E_pad != E:
        w_t = jnp.pad(w_t, ((0, K_pad - Cpp), (0, E_pad - E)))
    if E_pad != E:
        b2 = jnp.pad(b2, ((0, 0), (0, E_pad - E)))

    # ---- M tiling: big TM, but always >= 2 (preferably even) grid steps so the
    # single "parallel" axis shards across v7x's two TensorCores.
    n_steps = max(2, pl.cdiv(M, block_m))
    if n_steps > 2 and n_steps % 2:
        n_steps += 1
    TM = _round_up(pl.cdiv(M, n_steps), 8)

    # ---- VMEM policy: limit = max(1.25 * need, 4 MiB); if the need exceeds the
    # per-generation cap (~3/4 of physical VMEM), shrink TM -- never the limit.
    try:
        vmem_phys = int(pltpu.get_tpu_info().vmem_capacity_bytes)
    except Exception:
        vmem_phys = 64 * 1024 * 1024          # v7x-safe fallback
    vmem_cap = (vmem_phys * 3) // 4           # ~48 MiB v7x, ~96 MiB v5e/v6e

    def vmem_need(tm):
        # streaming tiles double-buffered; weight/bias counted double-buffered
        # too (conservative, covers the Buffered(1) fallback); 25% headroom.
        return int(1.25 * (2 * tm * K_pad * 2                 # patch tiles bf16
                           + 2 * tm * E_pad * out_itemsize    # output tiles
                           + 2 * (K_pad * E_pad * 2 + E_pad * 4)))  # weight+bias

    while TM > 8 and vmem_need(TM) > vmem_cap:
        TM = max(8, _round_up(TM // 2, 8))
    if TM >= M:
        TM = M                                # single full block, no constraint
    grid_m = pl.cdiv(M, TM)
    vmem_limit = max(vmem_need(TM), 4 * 1024 * 1024)

    out = pl.pallas_call(
        patch_proj_kernel,
        out_shape=jax.ShapeDtypeStruct((M, E_pad), out_dtype),
        grid_spec=pltpu.PrefetchScalarGridSpec(
            num_scalar_prefetch=0,
            grid=(grid_m,),
            in_specs=[
                pl.BlockSpec((TM, K_pad), lambda i: (i, 0)),   # streaming patches
                _resident_spec((K_pad, E_pad)),                # resident weight
                _resident_spec((1, E_pad)),                    # resident bias
            ],
            out_specs=pl.BlockSpec((TM, E_pad), lambda i: (i, 0)),
        ),
        compiler_params=pltpu.CompilerParams(
            dimension_semantics=("parallel",),
            vmem_limit_bytes=int(vmem_limit),
        ),
    )(patches, w_t, b2)

    if E_pad != E:
        out = out[:, :E]
    return out.reshape(B, num_patches, E)


if __name__ == "__main__":
    # Small shapes consistent with the module's forward.
    B, C, H, W = 2, 4, 16, 16
    P = 4                     # patch_size = (4, 4)
    E = 32                    # embed_dim
    num_patches = (H // P) * (W // P)

    key = jax.random.PRNGKey(0)
    kx, kw, kb = jax.random.split(key, 3)
    x = jax.random.normal(kx, (B, C, H, W), dtype=jnp.float32)
    # Deterministic synthetic init of Conv2d(C, E, kernel=P, stride=P) params.
    weight = 0.05 * jax.random.normal(kw, (E, C, P, P), dtype=jnp.float32)
    bias = 0.05 * jax.random.normal(kb, (E,), dtype=jnp.float32)

    # Pure-JAX f32 reference (same 'grid' patch extraction + projection).
    def ref_fn(xq, wq, bq, Pq):
        Bq, Cq, Hq, Wq = xq.shape
        nh, nw = Hq // Pq, Wq // Pq
        xr = xq[:, :, : nh * Pq, : nw * Pq].reshape(Bq, Cq, nh, Pq, nw, Pq)
        xr = jnp.transpose(xr, (0, 2, 4, 1, 3, 5)).reshape(Bq, nh * nw, -1)
        return jnp.einsum("bnk,ek->bne", xr, wq.reshape(wq.shape[0], -1)) + bq

    # --- config 1: default out_dtype (x.dtype), even grid, exact M tiling ---
    out = jax.block_until_ready(custom_patch_embedding(x, weight, bias, P))
    assert out.shape == (B, num_patches, E)
    ref = ref_fn(x, weight, bias, P)
    tol = 3e-2 * max(1.0, float(jnp.max(jnp.abs(ref))))   # bf16-operand tolerance
    err = float(jnp.max(jnp.abs(out.astype(jnp.float32) - ref)))
    assert err < tol, f"max abs err {err} (tol {tol})"

    # --- config 2: ragged last M block (M=50, TM=32) + bf16 output path ---
    H2 = W2 = 20
    x2 = jax.random.normal(kx, (B, C, H2, W2), dtype=jnp.float32)
    out2 = jax.block_until_ready(
        custom_patch_embedding(x2, weight, bias, P, out_dtype=jnp.bfloat16))
    np2 = (H2 // P) * (W2 // P)
    assert out2.shape == (B, np2, E) and out2.dtype == jnp.bfloat16
    ref2 = ref_fn(x2, weight, bias, P)
    tol2 = 5e-2 * max(1.0, float(jnp.max(jnp.abs(ref2))))
    err2 = float(jnp.max(jnp.abs(out2.astype(jnp.float32) - ref2)))
    assert err2 < tol2, f"max abs err {err2} (tol {tol2})"

    print("KERNEL_OK")
</pallas_src>

<mosaic_0001>
module attributes {stable_mosaic.version = 11 : i64} {
  func.func @patch_proj_kernel(%arg0: i32, %arg1: memref<16x128xbf16, #tpu.memory_space<vmem>>, %arg2: memref<128x128xbf16, #tpu.memory_space<vmem>>, %arg3: memref<1x128xf32, #tpu.memory_space<vmem>>, %arg4: memref<16x128xf32, #tpu.memory_space<vmem>>) attributes {dimension_semantics = [#tpu.dimension_semantics<parallel>], iteration_bounds = array<i64: 2>, scalar_prefetch = 0 : i64, scratch_operands = 0 : i64, tpu.core_type = #tpu.core_type<tc>, window_params = [{transform_indices = @transform_0, window_bounds = array<i64: 16, 128>}, {pipeline_mode = #tpu.pipeline_mode<synchronous>, transform_indices = @transform_1, window_bounds = array<i64: 128, 128>}, {pipeline_mode = #tpu.pipeline_mode<synchronous>, transform_indices = @transform_2, window_bounds = array<i64: 1, 128>}, {transform_indices = @transform_3, window_bounds = array<i64: 16, 128>}]} {
    %c0 = arith.constant 0 : index
    %c0_0 = arith.constant 0 : index
    %0 = vector.load %arg1[%c0, %c0_0] : memref<16x128xbf16, #tpu.memory_space<vmem>>, vector<16x128xbf16>
    %c0_1 = arith.constant 0 : index
    %c0_2 = arith.constant 0 : index
    %1 = vector.load %arg2[%c0_1, %c0_2] : memref<128x128xbf16, #tpu.memory_space<vmem>>, vector<128x128xbf16>
    %cst = arith.constant dense<0.000000e+00> : vector<16x128xf32>
    %2 = tpu.matmul %0, %1, %cst {dimension_numbers = #tpu.dot_dimension_numbers<[1], [0], [0], [1], [0, 0, 1, 1], [], []>} : vector<16x128xbf16>, vector<128x128xbf16>, vector<16x128xf32> -> vector<16x128xf32>
    %c0_3 = arith.constant 0 : index
    %c0_4 = arith.constant 0 : index
    %3 = vector.load %arg3[%c0_3, %c0_4] : memref<1x128xf32, #tpu.memory_space<vmem>>, vector<1x128xf32>
    %4 = vector.broadcast %3 : vector<1x128xf32> to vector<16x128xf32>
    %5 = arith.addf %2, %4 : vector<16x128xf32>
    %c0_5 = arith.constant 0 : index
    %c0_6 = arith.constant 0 : index
    %6 = vector.load %arg4[%c0_5, %c0_6] : memref<16x128xf32, #tpu.memory_space<vmem>>, vector<16x128xf32>
    tpu.vector_store %arg4[%c0_5, %c0_6], %5 {strides = array<i32>} : memref<16x128xf32, #tpu.memory_space<vmem>>, vector<16x128xf32>,
    return
  }
  func.func @transform_0(%arg0: i32) -> (i32, i32) {
    %c0_i32 = arith.constant 0 : i32
    %c0_i32_0 = arith.constant 0 : i32
    return %arg0, %c0_i32 : i32, i32
  }
  func.func @transform_1(%arg0: i32) -> (i32, i32) {
    %c0_i32 = arith.constant 0 : i32
    %c0_i32_0 = arith.constant 0 : i32
    %c0_i32_1 = arith.constant 0 : i32
    return %c0_i32, %c0_i32_0 : i32, i32
  }
  func.func @transform_2(%arg0: i32) -> (i32, i32) {
    %c0_i32 = arith.constant 0 : i32
    %c0_i32_0 = arith.constant 0 : i32
    %c0_i32_1 = arith.constant 0 : i32
    return %c0_i32, %c0_i32_0 : i32, i32
  }
  func.func @transform_3(%arg0: i32) -> (i32, i32) {
    %c0_i32 = arith.constant 0 : i32
    %c0_i32_0 = arith.constant 0 : i32
    return %arg0, %c0_i32 : i32, i32
  }
}

</mosaic_0001>

<bundles_post_ra>
// kernel: tpu_custom_call.1
= control target key start
LH: loop header
LB: loop body
LE: loop exit
PB: predicated region body
PF: predicated region fallthrough
CT: control target
= control target key end

     0   :  { %8 = vsyncpa [#allocation3], 0  ;;  %s831_s0 = inlined_call_operand.hbm [shape: bf16[32,128], index: 0, kind: input, shape index: {}]   ;;  %s832_s1 = inlined_call_operand.hbm [shape: bf16[128,128], index: 1, kind: input, shape index: {}]   ;;  %s833_s2 = inlined_call_operand.vmem [shape: f32[1,128], index: 2, kind: input, shape index: {}]   ;;  %s834_s3 = inlined_call_operand.hbm [shape: f32[32,128], index: 3, kind: output, shape index: {}]  }
   0x1   :  { %10 = vsyncpa [#allocation3 + $0x1], 0 }
   0x2   :  { %11 = vsyncpa [#allocation6], 0 }
   0x3   :  { %12 = vsyncpa [#allocation4], 0 }
   0x4   :  { %14 = vsyncpa [#allocation4 + $0x1], 0  ;;  %s683_s12 = smov 0   ;;  %s685_s13 = smov 0  }
   0x5   :  { %s687_s14 = smov 0   ;;  %s689_s15 = smov 0  }
   0x6 LB: > { %s704_s16 = sadd.s32 4294967295, %s656_s15   ;;  %s401_s17 = sadd.s32 4294967294, %s656_s15   ;;  %s656_s15 = sphi %s689_s15, %s844_s15   ;;  %s652_s14 = sphi %s687_s14, %s843_s14   ;;  %s648_s13 = sphi %s685_s13, %s842_s13   ;;  %s644_s12 = sphi %s683_s12, %s841_s12  }
   0x7   : > { %p40_p0 = scmp.ne.s32.totalorder %s648_s13, %s644_s12  ;;  %p41_p1 = scmp.eq.s32.totalorder %s704_s16, 0 }
   0x8   : > { %p106_p2 = scmp.eq.s32.totalorder %s704_s16, 1  ;;  %p112_p3 = scmp.eq.s32.totalorder %s401_s17, 1 }
   0x9   : > { %p713_p4 = por %p41_p1, %p40_p0  ;;  %p402_p5 = scmp.ge.s32.totalorder %s656_s15, 1 }
   0xa   : > { %p718_p6 = por %p112_p3, %p40_p0  ;;  %p119_p7 = scmp.lt.s32.totalorder %s656_s15, 3 }
   0xb   : > { %s130_s22 = sshll.u32 %s832_s1, 4  ;;  %s658_s24 = smov [#allocation5]   ;;  %s131_s22 = int_to_ptr.hbm [resolvable:$true] %s130_s22 }
   0xc   : > { %p726_p8 = pnand %p402_p5, %p119_p7  ;;  %s132_s25 = sshll.u32 %s658_s24, 4  ;;  %s133_s25 = int_to_ptr.vmem [resolvable:$true] %s132_s25 }
   0xd   : > { %s736_s26 = sadd.s32 1, %s656_s15   ;;  %s659_s27 = smov 64  }
   0xe   : > { %p472_p9 = pneg %p726_p8  ;;  %s660_s28 = smov 4  }
   0xf   : > { %s24_s29 = ssub.s32 %s656_s15, %s736_s26  ;;  %s27_s30 = sadd.s32 1, %s652_s14 }
  0x10   : > { %p473_p10 = pnand %p472_p9, %p41_p1  ;;  %p25_p12 = scmp.eq.s32.totalorder %s24_s29, 0 }
  0x11   : > { %p34_p13 = scmp.ne.s32.totalorder %s652_s14, %s648_s13  ;;  %p35_p0 = scmp.eq.s32.totalorder %s656_s15, 0 }
  0x12   : > { %475 = dma.hbm_to_vmem [thread:$0]  (!%p473_p10), %s131_s22, 1024, %s133_s25, [#allocation6], %s659_s27, %s659_s27, %s660_s28  }
  0x13   : > { %s748_s4 = scalar_select %p25_p12, %s652_s14, %s27_s30  }
  0x14   : > { %p752_p3 = por %p106_p2, %p34_p13  ;;  %p485_p5 = scmp.lt.s32.totalorder %s656_s15, 2 }
  0x15   : > { %s149_s6 = sand.u32 1, %s652_s14   ;;  %s453_s7 = sshll.u32 %s656_s15, 3 }
  0x16   : > { %p36_p7 = por %p35_p0, %p34_p13  ;;  %s405_s8 = sshll.u32 %s149_s6, 3 }
  0x17   : > { %s158_s11 = scalar_lea.hbm %s831_s0, %s453_s7  ;;  %s153_s20 = scalar_lea.vmem [#allocation2], %s405_s8 }
  0x18   : > { %s159_s17 = sshll.u32 %s158_s11, 4  ;;  %s161_s21 = sshll.u32 %s153_s20, 4  ;;  %s160_s17 = int_to_ptr.hbm [resolvable:$true] %s159_s17  ;;  %s162_s21 = int_to_ptr.vmem [resolvable:$true] %s161_s21 }
  0x19   : > { %p762_p9 = pnand %p485_p5, %p36_p7  ;;  %s150_s24 = scalar_lea.sflag [#allocation3], %s149_s6 }
  0x1a   : > { %s556_s25 = sshra.s32 %s160_s17, 4  ;;  %s563_s8 = scalar_lea.hbm %s831_s0, 16  ;;  %s557_s25 = int_to_ptr.hbm [resolvable:$true] %s556_s25 }
  0x1b   : > { %s558_s29 = scalar_lea.hbm %s557_s25, 8  ;;  %p560_p10 = pneg %p762_p9 }
  0x1c   : > { %p559_p2 = scmp.ne.s32.totalorder %s557_s25, %s558_s29  ;;  %p564_p0 = scmp.lt.s32.totalorder %s557_s25, %s831_s0 }
  0x1d   : > { %p565_p5 = scmp.lt.s32.totalorder %s563_s8, %s558_s29 }
  0x1e   : > { %p561_p12 = pnand %p560_p10, %p559_p2 }
  0x1f   : > { %p566_p7 = por %p565_p5, %p564_p0 }
  0x20   : > { %p562_p13 = pneg %p561_p12 }
  0x22   : > { %p567_p11 = pnand %p566_p7, %p562_p13 }
  0x24   : > { %570 = shalt.err (!%p567_p11)
}
  0x25   : > { %479 = dma.hbm_to_vmem [thread:$0]  (!%p762_p9), %s160_s17, 128, %s162_s21, %s150_s24, %s659_s27, %s659_s27, %s660_s28  }
  0x26   : > { %173 = sbr.rel (%p726_p8) target bundleno = 218 (0xda), region = 32  ;;  %s782_s6 = sand.u32 (!%p726_p8), 1, %s648_s13  }
  0x27   : > { %s409_s11 = sshll.u32 (!%p726_p8), %s782_s6, 3  ;;  %s176_s20 = scalar_lea.sflag (!%p726_p8), [#allocation3], %s782_s6 }
  0x28   : > { %s179_s25 = scalar_lea.vmem (!%p726_p8), [#allocation2], %s409_s11 }
  0x2b   : > { %631 = dma.done.wait (%p713_p4), %s176_s20, 128  }
  0x2c   : > { %633 = vsyncadd (%p713_p4), %s176_s20, 4294967168 }
  0x2d   : > { %635 = dma.done.wait (%p41_p1), [#allocation6], 1024  }
  0x2e   : > { %637 = vsyncadd (%p41_p1), [#allocation6], 4294966272  ;;  %v462_v0 = vld [vmem:[#allocation5 + $0x38] sm:$0xff]  ;;  %v461_v1 = vld [vmem:[#allocation5 + $0x30] sm:$0xff]  ;;  %s411_s18 = sshll.u32 %s782_s6, 4  ;;  %s463_s28 = sshll.u32 %s704_s16, 4 }
  0x2f   : > { %286 = vmatpush.bf16.msra.mxu0 %v462_v0  ;;  %v460_v2 = vld [vmem:[#allocation5 + $0x28] sm:$0xff]  ;;  %v459_v3 = vld [vmem:[#allocation5 + $0x20] sm:$0xff]  ;;  %v458_v4 = vld [vmem:[#allocation5 + $0x18] sm:$0xff]  ;;  %s314_s22 = scalar_lea.hbm %s834_s3, %s463_s28  ;;  %s207_s24 = scalar_lea.vmem [#allocation7], %s411_s18 }
  0x30   : > { %v457_v5 = vld [vmem:[#allocation5 + $0x10] sm:$0xff]  ;;  %v456_v6 = vld [vmem:[#allocation5 + $0x8] sm:$0xff]  ;;  %v455_v7 = vld [vmem:[#allocation5] sm:$0xff]  ;;  %s315_s29 = sshll.u32 %s207_s24, 4  ;;  %s317_s30 = sshll.u32 %s314_s22, 4  ;;  %s316_s29 = int_to_ptr.vmem [resolvable:$true] %s315_s29  ;;  %s318_s30 = int_to_ptr.hbm [resolvable:$true] %s317_s30 }
  0x31   : > { %v454_v8 = vld [vmem:[%s179_s25] sm:$0xff]  ;;  %s303_s7 = scalar_lea.sflag [#allocation4], %s782_s6  ;;  %s600_s8 = sshra.s32 %s318_s30, 4  ;;  %s601_s8 = int_to_ptr.hbm [resolvable:$true] %s600_s8 }
  0x32   : > { %v525_v9 = vld [vmem:[%s833_s2] ss:$0 sm:$0xff]  ;;  %s602_s16 = scalar_lea.hbm %s601_s8, 16  ;;  %s606_s11 = scalar_lea.hbm %s834_s3, 32 }
  0x33   : > { %287 = vmatpush.bf16.msra.mxu0 %v461_v1  ;;  %p603_p1 = scmp.ne.s32.totalorder %s601_s8, %s602_s16  ;;  %p607_p11 = scmp.lt.s32.totalorder %s601_s8, %s834_s3 }
  0x34   : > { %p608_p9 = scmp.lt.s32.totalorder %s606_s11, %s602_s16 }
  0x35   : > { %p604_p4 = pnand %p603_p1, %p752_p3 }
  0x36   : > { %p609_p2 = por %p608_p9, %p607_p11 }
  0x37   : > { %288 = vmatpush.bf16.msra.mxu0 %v460_v2  ;;  %p605_p8 = pneg %p604_p4 }
  0x39   : > { %p610_p10 = pnand %p609_p2, %p605_p8 }
  0x3b   : > { %289 = vmatpush.bf16.msra.mxu0 %v459_v3 }
  0x3f   : > { %290 = vmatpush.bf16.msra.mxu0 %v458_v4 }
  0x43   : > { %291 = vmatpush.bf16.msra.mxu0 %v457_v5 }
  0x47   : > { %292 = vmatpush.bf16.msra.mxu0 %v456_v6 }
  0x4b   : > { %293 = vmatpush.bf16.msra.mxu0 %v455_v7 }
  0x4e   : > { %294 = vmatmul.bf16.vlgmr.msra.gmra.mxu0 %v454_v8 }
  0xcb   : > { %v295_v10 = vpop.f32.mrf.mxu0 }
  0xcc   : > { %v296_v11 = vadd.f32 %v525_v9, %v295_v10 }
  0xce   : > { %300 = vst [vmem:[%s207_s24] sm:$0xff] %v296_v11 }
  0xd3   : > { %v297_v12 = vpop.f32.mrf.mxu0 }
  0xd4   : > { %v298_v13 = vadd.f32 %v525_v9, %v297_v12 }
  0xd6   : > { %301 = vst [vmem:[%s207_s24 + $0x8] sm:$0xff] %v298_v13 }
  0xd7   : > { %613 = shalt.err (!%p610_p10)
}
  0xd8   : > { %s661_s6 = smov 128   ;;  %s662_s18 = smov 8  }
  0xd9   : > { %470 = dma.vmem_to_hbm [thread:$0]  (%p752_p3), %s316_s29, 256, %s318_s30, %s303_s7, %s661_s6, %s661_s6, %s662_s18  }
  0xda PF: > { %s332_s23 = sand.u32 1, %s644_s12   ;;  %p840_p12 = scmp.ge.s32.totalorder %s656_s15, 2 }
  0xdb   : > { %s333_s27 = scalar_lea.sflag [#allocation4], %s332_s23 }
  0xdc   : > { %p481_p13 = pnand %p840_p12, %p718_p6 }
  0xde   : > { %p482_p0 = pneg %p481_p13 }
  0xe0   : > { %639 = dma.done.wait (%p482_p0), %s333_s27, 256  }
  0xe1   : > { %641 = vsyncadd (%p482_p0), %s333_s27, 4294967040  ;;  %p17_p5 = scmp.ge.s32.totalorder %s736_s26, 4   ;;  %s841_s12 = smov %s648_s13 }
  0xe2   : > { %s842_s13 = smov %s652_s14  ;;  %s843_s14 = smov %s748_s4 }
  0xe3   : > { %s844_s15 = smov %s736_s26  ;;  %19 = sbr.rel (!%p17_p5) target bundleno = 6 (0x6), region = 81 }
  0xe8   :  { %339 = vsyncpa [#allocation3], 1 }
  0xe9   :  { %341 = vsyncpa [#allocation3 + $0x1], 1 }
  0xea   :  { %342 = vsyncpa [#allocation6], 1 }
  0xeb   :  { %343 = vsyncpa [#allocation4], 1 }
  0xec   :  { %345 = vsyncpa [#allocation4 + $0x1], 1 }

</bundles_post_ra>
